<compile_context>
chip_gen: v7x
topology: tpu7x:2x2x1
jax: 0.10.0
libtpu: 0.0.40
codegen_flags: <defaults>
</compile_context>

<pallas_src>
import jax
import jax.numpy as jnp
from jax.experimental import pallas as pl
from jax.experimental.pallas import tpu as pltpu


def _round_up(x, m):
    return ((x + m - 1) // m) * m


def user_embedding_kernel(ids_ref, fused_t_ref, b_ref, out_ref):
    ids = ids_ref[...]                                  # (S, TB) int32
    S, TB = ids.shape
    V = fused_t_ref.shape[1]

    # Vocab ids on the sublane axis, batch on the (dense) lane axis.
    vocab_iota = jax.lax.broadcasted_iota(jnp.int32, (V, TB), 0)

    # Unrolled accumulation over the short, static sequence axis:
    #   counts[v, b] = #{s : ids[s, b] == v}.  Live intermediates stay 2-D.
    counts = (ids[0:1, :] == vocab_iota).astype(jnp.int32)
    for s in range(1, S):
        counts = counts + (ids[s:s + 1, :] == vocab_iota).astype(jnp.int32)
    counts = counts.astype(jnp.float32)                 # exact: values in [0, S]

    # Single MXU pass: (O, V) @ (V, TB) -> (O, TB); lane-dense output block.
    out = jnp.dot(fused_t_ref[...], counts, preferred_element_type=jnp.float32)
    out_ref[...] = (out + b_ref[...]).astype(out_ref.dtype)


def _choose_tile(B, cap):
    """Lane-dense batch tile minimizing padding; >=2 grid steps for big B."""
    if B <= 128:
        return B, B                                     # single full-extent block
    cands = [c for c in (4096, 2048, 1024, 512, 256, 128) if c <= max(cap, 128)]
    tb = min(cands, key=lambda c: (_round_up(B, c) - B, -c))
    b_pad = _round_up(B, tb)
    if b_pad // tb == 1 and tb >= 256:
        tb //= 2                                        # let v7x's 2 TCs split the grid
        b_pad = _round_up(B, tb)
    return tb, b_pad


def user_embedding_forward(user_ids, table, weight, bias, *, block_b=1024):
    B, S = user_ids.shape
    V, D = table.shape
    O = weight.shape[0]

    if B == 0:
        return jnp.zeros((0, O), jnp.float32)

    # Fold embedding table and linear weight once: fused_t = W @ E.T  (O, V).
    fused_t = jnp.dot(weight.astype(jnp.float32), table.astype(jnp.float32).T,
                      preferred_element_type=jnp.float32,
                      precision=jax.lax.Precision.HIGHEST)
    bias2d = bias.reshape(O, 1).astype(jnp.float32)

    # Batch on the lane axis: transpose ids to (S, B) and pad to the tile.
    ids_t = user_ids.astype(jnp.int32).T
    tb, b_pad = _choose_tile(B, block_b)
    if b_pad != B:
        ids_t = jnp.pad(ids_t, ((0, 0), (0, b_pad - B)))   # padded cols sliced off

    out_t = pl.pallas_call(
        user_embedding_kernel,
        out_shape=jax.ShapeDtypeStruct((O, b_pad), jnp.float32),
        grid=(b_pad // tb,),
        in_specs=[
            pl.BlockSpec((S, tb), lambda i: (0, i)),    # ids: tiled over batch lanes
            pl.BlockSpec((O, V), lambda i: (0, 0)),     # fused table: broadcast
            pl.BlockSpec((O, 1), lambda i: (0, 0)),     # bias: broadcast
        ],
        out_specs=pl.BlockSpec((O, tb), lambda i: (0, i)),  # lane-dense (O, tb)
        compiler_params=pltpu.CompilerParams(
            dimension_semantics=("parallel",)),         # shards batch on v7x 2xTC
    )(ids_t, fused_t, bias2d)

    return out_t[:, :B].T                               # (B, O)


if __name__ == "__main__":
    # Deterministic parameter init (matching PyTorch default init schemes).
    key = jax.random.PRNGKey(0)
    k_emb, k_w, k_b, k_ids = jax.random.split(key, 4)

    V, D, O = 30, 12, 3
    B, S = 2, 8

    # nn.Embedding default: N(0, 1)
    table = jax.random.normal(k_emb, (V, D), dtype=jnp.float32)
    # nn.Linear default: U(-1/sqrt(in), 1/sqrt(in))
    bound = 1.0 / (D ** 0.5)
    weight = jax.random.uniform(k_w, (O, D), minval=-bound, maxval=bound,
                                dtype=jnp.float32)
    bias = jax.random.uniform(k_b, (O,), minval=-bound, maxval=bound,
                              dtype=jnp.float32)

    user_ids = jax.random.randint(k_ids, (B, S), 0, V, dtype=jnp.int32)

    out = user_embedding_forward(user_ids, table, weight, bias)
    out = jax.block_until_ready(out)

    # Reference check in plain JAX (embedding gather + sum + linear).
    ref = jnp.take(table, user_ids, axis=0).sum(axis=1) @ weight.T + bias
    assert out.shape == (B, O)
    assert jnp.allclose(out, ref, atol=1e-5, rtol=1e-5)

    print("KERNEL_OK")
</pallas_src>

<mosaic_0001>
module attributes {stable_mosaic.version = 11 : i64} {
  func.func @user_embedding_kernel(%arg0: i32, %arg1: memref<8x2xi32, #tpu.memory_space<vmem>>, %arg2: memref<3x30xf32, #tpu.memory_space<vmem>>, %arg3: memref<3x1xf32, #tpu.memory_space<vmem>>, %arg4: memref<3x2xf32, #tpu.memory_space<vmem>>) attributes {dimension_semantics = [#tpu.dimension_semantics<parallel>], iteration_bounds = array<i64: 1>, scalar_prefetch = 0 : i64, scratch_operands = 0 : i64, tpu.core_type = #tpu.core_type<tc>, window_params = [{transform_indices = @transform_0, window_bounds = array<i64: 8, 2>}, {pipeline_mode = #tpu.pipeline_mode<synchronous>, transform_indices = @transform_1, window_bounds = array<i64: 3, 30>}, {pipeline_mode = #tpu.pipeline_mode<synchronous>, transform_indices = @transform_2, window_bounds = array<i64: 3, 1>}, {transform_indices = @transform_3, window_bounds = array<i64: 3, 2>}]} {
    %c0 = arith.constant 0 : index
    %c0_0 = arith.constant 0 : index
    %0 = vector.load %arg1[%c0, %c0_0] : memref<8x2xi32, #tpu.memory_space<vmem>>, vector<8x2xi32>
    %1 = tpu.iota {dimensions = array<i32: 0>} : vector<30x2xi32>
    %2 = vector.extract_strided_slice %0 {offsets = [0, 0], sizes = [1, 2], strides = [1, 1]} : vector<8x2xi32> to vector<1x2xi32>
    %3 = vector.broadcast %2 : vector<1x2xi32> to vector<30x2xi32>
    %4 = arith.cmpi eq, %3, %1 : vector<30x2xi32>
    %5 = arith.extui %4 : vector<30x2xi1> to vector<30x2xi32>
    %6 = vector.extract_strided_slice %0 {offsets = [1, 0], sizes = [1, 2], strides = [1, 1]} : vector<8x2xi32> to vector<1x2xi32>
    %7 = vector.broadcast %6 : vector<1x2xi32> to vector<30x2xi32>
    %8 = arith.cmpi eq, %7, %1 : vector<30x2xi32>
    %9 = arith.extui %8 : vector<30x2xi1> to vector<30x2xi32>
    %10 = arith.addi %5, %9 : vector<30x2xi32>
    %11 = vector.extract_strided_slice %0 {offsets = [2, 0], sizes = [1, 2], strides = [1, 1]} : vector<8x2xi32> to vector<1x2xi32>
    %12 = vector.broadcast %11 : vector<1x2xi32> to vector<30x2xi32>
    %13 = arith.cmpi eq, %12, %1 : vector<30x2xi32>
    %14 = arith.extui %13 : vector<30x2xi1> to vector<30x2xi32>
    %15 = arith.addi %10, %14 : vector<30x2xi32>
    %16 = vector.extract_strided_slice %0 {offsets = [3, 0], sizes = [1, 2], strides = [1, 1]} : vector<8x2xi32> to vector<1x2xi32>
    %17 = vector.broadcast %16 : vector<1x2xi32> to vector<30x2xi32>
    %18 = arith.cmpi eq, %17, %1 : vector<30x2xi32>
    %19 = arith.extui %18 : vector<30x2xi1> to vector<30x2xi32>
    %20 = arith.addi %15, %19 : vector<30x2xi32>
    %21 = vector.extract_strided_slice %0 {offsets = [4, 0], sizes = [1, 2], strides = [1, 1]} : vector<8x2xi32> to vector<1x2xi32>
    %22 = vector.broadcast %21 : vector<1x2xi32> to vector<30x2xi32>
    %23 = arith.cmpi eq, %22, %1 : vector<30x2xi32>
    %24 = arith.extui %23 : vector<30x2xi1> to vector<30x2xi32>
    %25 = arith.addi %20, %24 : vector<30x2xi32>
    %26 = vector.extract_strided_slice %0 {offsets = [5, 0], sizes = [1, 2], strides = [1, 1]} : vector<8x2xi32> to vector<1x2xi32>
    %27 = vector.broadcast %26 : vector<1x2xi32> to vector<30x2xi32>
    %28 = arith.cmpi eq, %27, %1 : vector<30x2xi32>
    %29 = arith.extui %28 : vector<30x2xi1> to vector<30x2xi32>
    %30 = arith.addi %25, %29 : vector<30x2xi32>
    %31 = vector.extract_strided_slice %0 {offsets = [6, 0], sizes = [1, 2], strides = [1, 1]} : vector<8x2xi32> to vector<1x2xi32>
    %32 = vector.broadcast %31 : vector<1x2xi32> to vector<30x2xi32>
    %33 = arith.cmpi eq, %32, %1 : vector<30x2xi32>
    %34 = arith.extui %33 : vector<30x2xi1> to vector<30x2xi32>
    %35 = arith.addi %30, %34 : vector<30x2xi32>
    %36 = vector.extract_strided_slice %0 {offsets = [7, 0], sizes = [1, 2], strides = [1, 1]} : vector<8x2xi32> to vector<1x2xi32>
    %37 = vector.broadcast %36 : vector<1x2xi32> to vector<30x2xi32>
    %38 = arith.cmpi eq, %37, %1 : vector<30x2xi32>
    %39 = arith.extui %38 : vector<30x2xi1> to vector<30x2xi32>
    %40 = arith.addi %35, %39 : vector<30x2xi32>
    %41 = arith.sitofp %40 : vector<30x2xi32> to vector<30x2xf32>
    %c0_1 = arith.constant 0 : index
    %c0_2 = arith.constant 0 : index
    %42 = vector.load %arg2[%c0_1, %c0_2] : memref<3x30xf32, #tpu.memory_space<vmem>>, vector<3x30xf32>
    %cst = arith.constant dense<0.000000e+00> : vector<3x2xf32>
    %43 = tpu.matmul %42, %41, %cst {dimension_numbers = #tpu.dot_dimension_numbers<[1], [0], [0], [1], [0, 0, 1, 1], [], []>} : vector<3x30xf32>, vector<30x2xf32>, vector<3x2xf32> -> vector<3x2xf32>
    %c0_3 = arith.constant 0 : index
    %c0_4 = arith.constant 0 : index
    %44 = vector.load %arg3[%c0_3, %c0_4] : memref<3x1xf32, #tpu.memory_space<vmem>>, vector<3x1xf32>
    %45 = vector.broadcast %44 : vector<3x1xf32> to vector<3x2xf32>
    %46 = arith.addf %43, %45 : vector<3x2xf32>
    %c0_5 = arith.constant 0 : index
    %c0_6 = arith.constant 0 : index
    %47 = vector.load %arg4[%c0_5, %c0_6] : memref<3x2xf32, #tpu.memory_space<vmem>>, vector<3x2xf32>
    tpu.vector_store %arg4[%c0_5, %c0_6], %46 {strides = array<i32>} : memref<3x2xf32, #tpu.memory_space<vmem>>, vector<3x2xf32>,
    return
  }
  func.func @transform_0(%arg0: i32) -> (i32, i32) {
    %c0_i32 = arith.constant 0 : i32
    %c0_i32_0 = arith.constant 0 : i32
    return %c0_i32, %arg0 : i32, i32
  }
  func.func @transform_1(%arg0: i32) -> (i32, i32) {
    %c0_i32 = arith.constant 0 : i32
    %c0_i32_0 = arith.constant 0 : i32
    %c0_i32_1 = arith.constant 0 : i32
    return %c0_i32, %c0_i32_0 : i32, i32
  }
  func.func @transform_2(%arg0: i32) -> (i32, i32) {
    %c0_i32 = arith.constant 0 : i32
    %c0_i32_0 = arith.constant 0 : i32
    %c0_i32_1 = arith.constant 0 : i32
    return %c0_i32, %c0_i32_0 : i32, i32
  }
  func.func @transform_3(%arg0: i32) -> (i32, i32) {
    %c0_i32 = arith.constant 0 : i32
    %c0_i32_0 = arith.constant 0 : i32
    return %c0_i32, %arg0 : i32, i32
  }
}

</mosaic_0001>

<bundles_post_ra>
// kernel: tpu_custom_call.1
= control target key start
LH: loop header
LB: loop body
LE: loop exit
PB: predicated region body
PF: predicated region fallthrough
CT: control target
= control target key end

     0   :  { %v15_v0 = vlaneseq  ;;  %v270_v1 = vmov 0.0|0.0   ;;  %v271_v2 = vmov 0   ;;  %vm272_vm0 = vmmov 0   ;;  %s409_s0 = inlined_call_operand.vmem [shape: s32[8,2], index: 0, kind: input, shape index: {}]   ;;  %s410_s2 = inlined_call_operand.vmem [shape: f32[3,1], index: 2, kind: input, shape index: {}]   ;;  %s411_s1 = inlined_call_operand.vmem [shape: f32[3,30], index: 1, kind: input, shape index: {}]   ;;  %s412_s3 = inlined_call_operand.vmem [shape: f32[3,2], index: 3, kind: output, shape index: {}]  }
   0x1   :  { %257 = vmatprep.subr.bf16.mxu0 %v270_v1  ;;  %269 = vset.pattern.permute.xlu0 %v271_v2  ;;  %v273_v4 = vmov 0.0   ;;  %v149_v5 = vld [vmem:[%s410_s2] sm:$0x7] }
   0x2   :  { %v297_v3 = vshrl.u32 %v15_v0, 7  ;;  %254 = vmatprep.mubr.msk.f32.mxu0 %vm272_vm0, %v273_v4  ;;  %v14_v6 = vld [vmem:[%s409_s0] sm:$0xff]  ;;  %152 = vperm.xlu0 %269, %v149_v5  }
   0x4   :  { %v306_v7 = vadd.s32 8, %v297_v3  ;;  %v22_v8 = vsub.s32 0, %v297_v3  ;;  %v34_v9 = vsub.s32 1, %v297_v3  ;;  %v50_v10 = vsub.s32 2, %v297_v3 }
   0x5   :  { %v66_v11 = vsub.s32 3, %v297_v3  ;;  %v82_v12 = vsub.s32 4, %v297_v3  ;;  %v98_v13 = vsub.s32 5, %v297_v3  ;;  %v114_v14 = vsub.s32 6, %v297_v3 }
   0x6   :  { %v23_v15 = vrot.slane %v14_v6, %v22_v8  ;;  %v315_v16 = vrot.slane %v14_v6, %v34_v9  ;;  %v317_v17 = vrot.slane %v14_v6, %v50_v10  ;;  %v130_v18 = vsub.s32 7, %v297_v3 }
   0x7   :  { %v320_v19 = vrot.slane %v14_v6, %v66_v11  ;;  %v322_v20 = vrot.slane %v14_v6, %v82_v12  ;;  %v324_v21 = vrot.slane %v14_v6, %v98_v13  ;;  %v326_v22 = vrot.slane %v14_v6, %v114_v14 }
   0x8   :  { %vm24_vm1 = vcmp.eq.s32.totalorder %v23_v15, %v297_v3  ;;  %vm25_vm2 = vcmp.eq.s32.totalorder %v23_v15, %v306_v7  ;;  %vm36_vm3 = vcmp.eq.s32.totalorder %v315_v16, %v297_v3  ;;  %vm37_vm4 = vcmp.eq.s32.totalorder %v315_v16, %v306_v7 }
   0x9   :  { %v28_v23 = vsel %vm24_vm1, 1, %v271_v2  ;;  %v29_v24 = vsel %vm25_vm2, 1, %v271_v2  ;;  %v40_v25 = vsel %vm36_vm3, 1, %v271_v2  ;;  %v41_v26 = vsel %vm37_vm4, 1, %v271_v2 }
   0xa   :  { %v44_v27 = vadd.s32 %v40_v25, %v28_v23  ;;  %v45_v28 = vadd.s32 %v41_v26, %v29_v24  ;;  %vm52_vm5 = vcmp.eq.s32.totalorder %v317_v17, %v297_v3  ;;  %vm53_vm6 = vcmp.eq.s32.totalorder %v317_v17, %v306_v7 }
   0xb   :  { %v56_v29 = vsel %vm52_vm5, 1, %v271_v2  ;;  %v57_v30 = vsel %vm53_vm6, 1, %v271_v2  ;;  %vm68_vm7 = vcmp.eq.s32.totalorder %v320_v19, %v297_v3  ;;  %vm69_vm8 = vcmp.eq.s32.totalorder %v320_v19, %v306_v7 }
   0xc   :  { %v60_v31 = vadd.s32 %v56_v29, %v44_v27  ;;  %v61_v32 = vadd.s32 %v57_v30, %v45_v28  ;;  %v72_v33 = vsel %vm68_vm7, 1, %v271_v2  ;;  %v73_v34 = vsel %vm69_vm8, 1, %v271_v2  ;;  %v148_v29 = vld [vmem:[%s411_s1] sm:$0x7] }
   0xd   :  { %vm84_vm9 = vcmp.eq.s32.totalorder %v322_v20, %v297_v3  ;;  %vm85_vm10 = vcmp.eq.s32.totalorder %v322_v20, %v306_v7  ;;  %vm100_vm11 = vcmp.eq.s32.totalorder %v324_v21, %v297_v3  ;;  %vm101_vm12 = vcmp.eq.s32.totalorder %v324_v21, %v306_v7 }
   0xe   :  { %v76_v35 = vadd.s32 %v72_v33, %v60_v31  ;;  %v77_v36 = vadd.s32 %v73_v34, %v61_v32  ;;  %v88_v37 = vsel %vm84_vm9, 1, %v271_v2  ;;  %v89_v38 = vsel %vm85_vm10, 1, %v271_v2 }
   0xf   :  { %v104_v39 = vsel %vm100_vm11, 1, %v271_v2  ;;  %v105_v40 = vsel %vm101_vm12, 1, %v271_v2  ;;  %vm116_vm13 = vcmp.eq.s32.totalorder %v326_v22, %v297_v3  ;;  %vm117_vm14 = vcmp.eq.s32.totalorder %v326_v22, %v306_v7 }
  0x10   :  { %v92_v41 = vadd.s32 %v88_v37, %v76_v35  ;;  %v93_v42 = vadd.s32 %v89_v38, %v77_v36  ;;  %v120_v43 = vsel %vm116_vm13, 1, %v271_v2  ;;  %v121_v44 = vsel %vm117_vm14, 1, %v271_v2 }
  0x11   :  { %v131_v45 = vrot.slane %v14_v6, %v130_v18  ;;  %v18_v46 = vadd.s32 16, %v297_v3  ;;  %v19_v47 = vadd.s32 24, %v297_v3 }
  0x12   :  { %v108_v48 = vadd.s32 %v104_v39, %v92_v41  ;;  %v109_v49 = vadd.s32 %v105_v40, %v93_v42 }
  0x13   :  { %vm132_vm15 = vcmp.eq.s32.totalorder %v131_v45, %v297_v3  ;;  %vm133_vm0 = vcmp.eq.s32.totalorder %v131_v45, %v306_v7  ;;  %vm26_vm1 = vcmp.eq.s32.totalorder %v23_v15, %v18_v46  ;;  %vm27_vm2 = vcmp.eq.s32.totalorder %v23_v15, %v19_v47 }
  0x14   :  { %v124_v50 = vadd.s32 %v120_v43, %v108_v48  ;;  %v125_v51 = vadd.s32 %v121_v44, %v109_v49  ;;  %v136_v52 = vsel %vm132_vm15, 1, %v271_v2  ;;  %v137_v53 = vsel %vm133_vm0, 1, %v271_v2 }
  0x15   :  { %v30_v54 = vsel %vm26_vm1, 1, %v271_v2  ;;  %v31_v55 = vsel %vm27_vm2, 1, %v271_v2  ;;  %vm38_vm3 = vcmp.eq.s32.totalorder %v315_v16, %v18_v46  ;;  %vm39_vm4 = vcmp.eq.s32.totalorder %v315_v16, %v19_v47 }
  0x16   :  { %v140_v56 = vadd.s32 %v136_v52, %v124_v50  ;;  %v141_v57 = vadd.s32 %v137_v53, %v125_v51  ;;  %v42_v58 = vsel %vm38_vm3, 1, %v271_v2  ;;  %v43_v59 = vsel %vm39_vm4, 1, %v271_v2 }
  0x17   :  { %v46_v60 = vadd.s32 %v42_v58, %v30_v54  ;;  %v47_v61 = vadd.s32 %v43_v59, %v31_v55  ;;  %vm54_vm5 = vcmp.eq.s32.totalorder %v317_v17, %v18_v46  ;;  %vm55_vm6 = vcmp.eq.s32.totalorder %v317_v17, %v19_v47 }
  0x18   :  { %v144_v62 = vcvt.s32.f32 %v140_v56  ;;  %v145_v63 = vcvt.s32.f32 %v141_v57  ;;  %v58_v0 = vsel %vm54_vm5, 1, %v271_v2  ;;  %v59_v3 = vsel %vm55_vm6, 1, %v271_v2 }
  0x19   :  { %v62_v4 = vadd.s32 %v58_v0, %v46_v60  ;;  %v63_v5 = vadd.s32 %v59_v3, %v47_v61  ;;  %vm70_vm7 = vcmp.eq.s32.totalorder %v320_v19, %v18_v46  ;;  %vm71_vm8 = vcmp.eq.s32.totalorder %v320_v19, %v19_v47 }
  0x1a   :  { %v258_v6 = vpack.c.bf16 %v145_v63, %v144_v62  ;;  %v74_v7 = vsel %vm70_vm7, 1, %v271_v2  ;;  %v75_v8 = vsel %vm71_vm8, 1, %v271_v2  ;;  %vm86_vm9 = vcmp.eq.s32.totalorder %v322_v20, %v18_v46 }
  0x1b   :  { %v78_v9 = vadd.s32 %v74_v7, %v62_v4  ;;  %v79_v10 = vadd.s32 %v75_v8, %v63_v5  ;;  %vm87_vm10 = vcmp.eq.s32.totalorder %v322_v20, %v19_v47  ;;  %v90_v11 = vsel %vm86_vm9, 1, %v271_v2 }
  0x1c   :  { %259 = vmatpush3.bf16.msra.mxu0 %v258_v6  ;;  %v91_v12 = vsel %vm87_vm10, 1, %v271_v2  ;;  %vm102_vm11 = vcmp.eq.s32.totalorder %v324_v21, %v18_v46  ;;  %vm103_vm12 = vcmp.eq.s32.totalorder %v324_v21, %v19_v47  ;;  %vm118_vm13 = vcmp.eq.s32.totalorder %v326_v22, %v18_v46 }
  0x1d   :  { %260 = vmatprep.subr.bf16.mxu0 %v270_v1  ;;  %v94_v13 = vadd.s32 %v90_v11, %v78_v9  ;;  %v95_v14 = vadd.s32 %v91_v12, %v79_v10  ;;  %v106_v15 = vsel %vm102_vm11, 1, %v271_v2  ;;  %v107_v16 = vsel %vm103_vm12, 1, %v271_v2 }
  0x1e   :  { %vm119_vm14 = vcmp.eq.s32.totalorder %v326_v22, %v19_v47  ;;  %v122_v17 = vsel %vm118_vm13, 1, %v271_v2  ;;  %vm134_vm15 = vcmp.eq.s32.totalorder %v131_v45, %v18_v46  ;;  %vm135_vm0 = vcmp.eq.s32.totalorder %v131_v45, %v19_v47 }
  0x1f   :  { %v110_v18 = vadd.s32 %v106_v15, %v94_v13  ;;  %v111_v19 = vadd.s32 %v107_v16, %v95_v14  ;;  %v123_v20 = vsel %vm119_vm14, 1, %v271_v2  ;;  %v138_v21 = vsel %vm134_vm15, 1, %v271_v2 }
  0x20   :  { %v139_v1 = vsel %vm135_vm0, 1, %v271_v2  ;;  %vm159_vm1 = vcmask 1045504   ;;  %vm274_vm2 = vmmov 1   ;;  %vm155_vm4 = vcmask 244736  }
  0x21   :  { %v126_v23 = vadd.s32 %v122_v17, %v110_v18  ;;  %v127_v24 = vadd.s32 %v123_v20, %v111_v19  ;;  %vm262_vm3 = vmpackc.low %vm159_vm1, %vm274_vm2  ;;  %vm233_vm5 = vcmask 10240  }
  0x23   :  { %v142_v25 = vadd.s32 %v138_v21, %v126_v23  ;;  %v143_v26 = vadd.s32 %v139_v1, %v127_v24 }
  0x25   :  { %v146_v27 = vcvt.s32.f32 %v142_v25  ;;  %v147_v28 = vcvt.s32.f32 %v143_v26 }
  0x27   :  { %v261_v22 = vpack.c.bf16 %v147_v28, %v146_v27 }
  0x29   :  { %263 = vmatpush3.bf16.msk.msra.mxu0 %vm262_vm3, %v261_v22 }
  0x2c   :  { %255 = vmatmul.mubr.msk.f32.vlgmr.msra.gmra.mrb[0].mxu0 %vm155_vm4, %v148_v29 }
  0x81   :  { %v153_v30 = vpop.permute.xlu0 %152 }
  0xff   :  { %v229_v31 = vpop.f32.mrb[0].mxu0 }
 0x100   :  { %v230_v2 = vadd.f32 %v229_v31, %v153_v30  ;;  %v256_v32 = vpop.f32.mrb[1].mxu0 }
 0x102   :  { %234 = vst.msk [vmem:[%s412_s3] sm:$0x7] %vm233_vm5, %v230_v2 }

</bundles_post_ra>
